<compile_context>
chip_gen: v7x
topology: tpu7x:2x2x1
jax: 0.10.0
libtpu: 0.0.40
codegen_flags: <defaults>
</compile_context>

<pallas_src>
import functools

import jax
import jax.numpy as jnp
from jax.experimental import pallas as pl
from jax.experimental.pallas import tpu as pltpu


def _round_up(v, m):
    return (v + m - 1) // m * m


def _cdiv(a, b):
    return -(-a // b)


def _vmem_capacity_bytes():
    """Physical per-core VMEM; conservative 64 MiB fallback (valid on all gens)."""
    try:
        cap = int(pltpu.get_tpu_info().vmem_capacity_bytes)
        if cap > 0:
            return cap
    except Exception:
        pass
    return 64 * 1024 * 1024


def _bspec(shape, index_map, *, buffered=None):
    """BlockSpec with optional reduced multi-buffering (for grid-invariant inputs)."""
    if buffered is not None and hasattr(pl, "Buffered"):
        try:
            return pl.BlockSpec(shape, index_map, pipeline_mode=pl.Buffered(buffered))
        except Exception:
            pass
    return pl.BlockSpec(shape, index_map)


def _choose_tiles(n, c, vmem_bytes):
    """Pick dst tile TM, src tile TK (multiple of TM) and the padded node count."""
    tm = min(512, _round_up(n, 128))
    n0 = _round_up(n, tm)
    # Per-TK VMEM bytes: double-buffered h (bf16) + adj (int8) + a_src (f32),
    # plus ~3 live f32 [TM, TK] elementwise temporaries (e / p / mask-select).
    per_tk = 2 * (2 * c + tm + 32) + 12 * tm
    fixed = 2 * tm * c * 4 + tm * c * 4 + 3 * tm * 128 * 4 + 8 * c + (1 << 16)
    budget = vmem_bytes // 2 - fixed
    tk_cap = max(tm, min(4096, (max(budget, per_tk * 128) // per_tk) // 128 * 128))
    grid_k = max(1, _cdiv(n0, tk_cap))
    tk = _round_up(_cdiv(n0, grid_k), tm)
    n_pad = grid_k * tk
    return tm, tk, n_pad


# ---------------------------------------------------------------------------
# Kernel 1: linear projection + folded attention projections
# ---------------------------------------------------------------------------
def gat_project_kernel(x_ref, waug_ref, h_ref, av_ref, *, c):
    x = x_ref[...].astype(jnp.bfloat16)                       # [TM, F]
    w = waug_ref[...].astype(jnp.bfloat16)                    # [F, C+8]
    h_aug = jnp.dot(x, w, preferred_element_type=jnp.float32)  # [TM, C+8]
    h_ref[...] = h_aug[:, :c].astype(h_ref.dtype)             # bf16 features
    # Lane-dense attention-scalar slab: row 0 = a_src, row 1 = a_dst (rows 2..7
    # are zero padding).  One small XLU transpose per row block.
    av_ref[...] = h_aug[:, c:c + 8].T                         # [8, TM] f32


# ---------------------------------------------------------------------------
# Kernel 2: flash-style masked softmax + aggregation + bias (+ELU)
# ---------------------------------------------------------------------------
def gat_attend_kernel(h_ref, avs_ref, avd_ref, bias_ref, adj_ref, o_ref,
                      adst_sc, m_sc, l_sc, acc_sc, *, apply_elu):
    # h_ref   : [TK, C]  bf16  source features for this src block
    # avs_ref : [8, TK]  f32   row 0 = a_src for this src block
    # avd_ref : [8, TM]  f32   row 1 = a_dst for this dst block
    # adj_ref : [TM, TK] int8  adj[dst, src] != 0  <=> edge src -> dst
    k = pl.program_id(1)

    @pl.when(k == 0)
    def _init():
        adst_sc[...] = avd_ref[...].T[:, 1:2]                 # [TM, 1]
        # m init (-1e20) is strictly above the mask fill (-1e30) so an
        # all-masked src block keeps exp(e - m) == 0 and corr == 1 (no NaNs).
        m_sc[...] = jnp.full_like(m_sc, -1e20)
        l_sc[...] = jnp.zeros_like(l_sc)
        acc_sc[...] = jnp.zeros_like(acc_sc)

    e = adst_sc[...] + avs_ref[0:1, :]                        # [TM, TK]
    e = jnp.maximum(e, 0.2 * e)                               # LeakyReLU(0.2)
    e = jnp.where(adj_ref[...] != 0, e, jnp.float32(-1e30))

    m_prev = m_sc[...]
    m_new = jnp.maximum(m_prev, jnp.max(e, axis=-1, keepdims=True))
    corr = jnp.exp(m_prev - m_new)
    p = jnp.exp(e - m_new)                                    # masked -> exact 0
    l_sc[...] = corr * l_sc[...] + jnp.sum(p, axis=-1, keepdims=True)
    acc_sc[...] = corr * acc_sc[...] + jnp.dot(
        p.astype(jnp.bfloat16), h_ref[...], preferred_element_type=jnp.float32)
    m_sc[...] = m_new

    @pl.when(k == pl.num_programs(1) - 1)
    def _finalize():
        # Normalize AFTER the aggregation matmul ([TM,C] instead of [TM,N]).
        out = acc_sc[...] * pl.reciprocal(l_sc[...], approx=True) + bias_ref[...]
        if apply_elu:
            out = jnp.where(out > 0, out, jnp.exp(out) - 1.0)  # ELU
        o_ref[...] = out.astype(o_ref.dtype)


# ---------------------------------------------------------------------------
# Per-layer wrapper
# ---------------------------------------------------------------------------
def gat_layer(x, w_aug, bias, adj_i8, c, apply_elu, out_dtype, tm, tk, vmem_limit):
    n, f = x.shape
    grid_i = n // tm
    grid_k = n // tk

    proj_params = pltpu.CompilerParams(
        dimension_semantics=("parallel",), vmem_limit_bytes=vmem_limit)
    att_params = pltpu.CompilerParams(
        dimension_semantics=("parallel", "arbitrary"), vmem_limit_bytes=vmem_limit)

    h, av = pl.pallas_call(
        functools.partial(gat_project_kernel, c=c),
        out_shape=(jax.ShapeDtypeStruct((n, c), jnp.bfloat16),
                   jax.ShapeDtypeStruct((8, n), jnp.float32)),
        grid=(grid_i,),
        in_specs=[pl.BlockSpec((tm, f), lambda i: (i, 0)),
                  _bspec((f, c + 8), lambda i: (0, 0), buffered=1)],   # grid-invariant
        out_specs=(pl.BlockSpec((tm, c), lambda i: (i, 0)),
                   pl.BlockSpec((8, tm), lambda i: (0, i))),
        compiler_params=proj_params,
    )(x, w_aug)

    out_bytes = 2 if out_dtype == jnp.bfloat16 else 4
    cost = pl.CostEstimate(
        flops=int(2 * n * n * c),
        transcendentals=int(n * n),
        bytes_accessed=int(n * n + grid_i * n * c * 2 + n * c * out_bytes + 8 * n * 4),
    )

    out = pl.pallas_call(
        functools.partial(gat_attend_kernel, apply_elu=apply_elu),
        out_shape=jax.ShapeDtypeStruct((n, c), out_dtype),
        grid=(grid_i, grid_k),
        in_specs=[pl.BlockSpec((tk, c), lambda i, k: (k, 0)),          # h (src block)
                  pl.BlockSpec((8, tk), lambda i, k: (0, k)),          # a_src slab
                  pl.BlockSpec((8, tm), lambda i, k: (0, i)),          # a_dst slab
                  _bspec((1, c), lambda i, k: (0, 0), buffered=1),     # bias
                  pl.BlockSpec((tm, tk), lambda i, k: (i, k))],        # adj block
        out_specs=pl.BlockSpec((tm, c), lambda i, k: (i, 0)),
        scratch_shapes=[pltpu.VMEM((tm, 1), jnp.float32),   # a_dst column
                        pltpu.VMEM((tm, 1), jnp.float32),   # running max m
                        pltpu.VMEM((tm, 1), jnp.float32),   # running denom l
                        pltpu.VMEM((tm, c), jnp.float32)],  # acc
        compiler_params=att_params,
        cost_estimate=cost,
    )(h, av, av, bias, adj_i8)
    return out


# ---------------------------------------------------------------------------
# Parameter init / padding helpers
# ---------------------------------------------------------------------------
def init_gat2_params(key, num_feat, hidden_dimension, num_layers, num_class):
    """Deterministic glorot-ish init for a GAT2 with heads = out_heads = 1."""
    layers = []
    dims_in = [num_feat] + [hidden_dimension] * (num_layers - 1)
    dims_out = [hidden_dimension] * (num_layers - 1) + [num_class]
    if num_layers == 1:
        dims_in, dims_out = [num_feat], [hidden_dimension]
    for li in range(num_layers):
        fin, fout = dims_in[li], dims_out[li]
        key, k1, k2, k3 = jax.random.split(key, 4)
        scale_w = (6.0 / (fin + fout)) ** 0.5
        scale_a = (6.0 / (1 + fout)) ** 0.5
        layers.append(dict(
            w=jax.random.uniform(k1, (fin, fout), jnp.float32, -scale_w, scale_w),
            att_src=jax.random.uniform(k2, (fout, 1), jnp.float32, -scale_a, scale_a),
            att_dst=jax.random.uniform(k3, (fout, 1), jnp.float32, -scale_a, scale_a),
            bias=jnp.zeros((1, fout), jnp.float32),
        ))
    return layers


def _prepare_layer(w, att_src, att_dst, bias, in_dim):
    """Pad out-channels to a lane-dense multiple of 128 and fold the attention
    projections into the weight matrix: W_aug = [W | W@a_src | W@a_dst | 0x6]."""
    fin, fout = w.shape
    cp = _round_up(fout, 128)
    w_p = jnp.zeros((in_dim, cp), jnp.float32).at[:fin, :fout].set(w)
    a_s = jnp.zeros((cp, 1), jnp.float32).at[:fout, :].set(att_src)
    a_d = jnp.zeros((cp, 1), jnp.float32).at[:fout, :].set(att_dst)
    b_p = jnp.zeros((1, cp), jnp.float32).at[:, :fout].set(bias)
    extra = jnp.zeros((in_dim, 6), jnp.float32)
    w_aug = jnp.concatenate([w_p, w_p @ a_s, w_p @ a_d, extra], axis=1)  # [in, cp+8]
    return w_aug, b_p, cp


# ---------------------------------------------------------------------------
# Full forward pass
# ---------------------------------------------------------------------------
def gat2_forward(layers, x, adj):
    """x: [N, F] float32; adj: [N, N] with adj[dst, src] != 0 for an edge."""
    n, f0 = x.shape
    num_layers = len(layers)

    c_pads = [_round_up(l["w"].shape[1], 128) for l in layers]
    vmem_cap = _vmem_capacity_bytes()
    vmem_limit = int(vmem_cap * 7 // 8)                # ~56 MiB v7x, ~112 MiB v5e/v6e
    tm, tk, n_pad = _choose_tiles(n, max(c_pads), vmem_cap)

    # Pad node dim; self-loops on every row (PyG add_self_loops default, and the
    # invariant that keeps every softmax denominator nonzero, incl. padded rows).
    xp = jnp.zeros((n_pad, f0), jnp.float32).at[:n, :].set(x)
    adj_p = jnp.zeros((n_pad, n_pad), jnp.int8).at[:n, :n].set(adj.astype(jnp.int8))
    diag = jnp.arange(n_pad)
    adj_p = adj_p.at[diag, diag].set(1)

    h = xp
    in_dim = f0
    for i, lyr in enumerate(layers):
        w_aug, bias_p, cp = _prepare_layer(lyr["w"], lyr["att_src"],
                                           lyr["att_dst"], lyr["bias"], in_dim)
        # F.dropout(..., training=False) -> identity; norm=None -> no BatchNorm.
        apply_elu = (i != num_layers - 1)
        out_dtype = jnp.bfloat16 if apply_elu else jnp.float32   # bf16 between layers
        h = gat_layer(h, w_aug, bias_p, adj_p, cp, apply_elu, out_dtype,
                      tm, tk, vmem_limit)
        in_dim = cp

    n_out = layers[-1]["w"].shape[1]
    return h[:n, :n_out]


# ---------------------------------------------------------------------------
# Pure-JAX reference (f32, dense) for a loose correctness check
# ---------------------------------------------------------------------------
def gat2_reference(layers, x, adj):
    n = x.shape[0]
    a = (adj.astype(jnp.float32) > 0).astype(jnp.float32)
    a = jnp.maximum(a, jnp.eye(n, dtype=jnp.float32))
    h = x
    for i, lyr in enumerate(layers):
        hw = h @ lyr["w"]
        asrc = (hw @ lyr["att_src"]).T          # [1, n]
        adst = hw @ lyr["att_dst"]              # [n, 1]
        e = adst + asrc
        e = jnp.where(e > 0, e, 0.2 * e)
        e = jnp.where(a > 0, e, -jnp.inf)
        e = e - jnp.max(e, axis=1, keepdims=True)
        p = jnp.exp(e)
        p = p / jnp.sum(p, axis=1, keepdims=True)
        out = p @ hw + lyr["bias"]
        if i != len(layers) - 1:
            out = jnp.where(out > 0, out, jnp.exp(out) - 1.0)
        h = out
    return h


if __name__ == "__main__":
    # Small synthetic graph: 128 nodes, 32 input features, 2-layer GAT,
    # hidden=32, 8 output classes, heads=1.
    N, F_IN, HIDDEN, NUM_CLASS, NUM_LAYERS, E = 128, 32, 32, 8, 2, 512

    key = jax.random.PRNGKey(0)
    key, kx, ke = jax.random.split(key, 3)

    x = jax.random.normal(kx, (N, F_IN), jnp.float32)
    edge_index = jax.random.randint(ke, (2, E), 0, N)          # [2, E] (src, dst)

    # Dense adjacency mask adj[dst, src] = 1 (self-loops added in the wrapper).
    adj = jnp.zeros((N, N), jnp.int8).at[edge_index[1], edge_index[0]].set(1)

    params = init_gat2_params(key, F_IN, HIDDEN, NUM_LAYERS, NUM_CLASS)

    out = gat2_forward(params, x, adj)
    out = jax.block_until_ready(out)
    assert out.shape == (N, NUM_CLASS), out.shape
    assert bool(jnp.all(jnp.isfinite(out)))

    # Loose tolerance: kernel uses bf16 features/attn-weights and the EUP
    # approximate reciprocal (expected drift ~1e-2 of the output scale).
    ref = gat2_reference(params, x, adj)
    scale = float(jnp.max(jnp.abs(ref))) + 1e-6
    err = float(jnp.max(jnp.abs(out - ref)))
    assert err <= 0.1 * scale + 0.05, ("max |out - ref| too large", err, scale)

    print("KERNEL_OK")
</pallas_src>

<mosaic_0001>
module attributes {stable_mosaic.version = 11 : i64} {
  func.func @gat_project_kernel(%arg0: i32, %arg1: memref<128x32xf32, #tpu.memory_space<vmem>>, %arg2: memref<32x136xf32, #tpu.memory_space<vmem>>, %arg3: memref<128x128xbf16, #tpu.memory_space<vmem>>, %arg4: memref<8x128xf32, #tpu.memory_space<vmem>>) attributes {dimension_semantics = [#tpu.dimension_semantics<parallel>], iteration_bounds = array<i64: 1>, scalar_prefetch = 0 : i64, scratch_operands = 0 : i64, tpu.core_type = #tpu.core_type<tc>, window_params = [{transform_indices = @transform_0, window_bounds = array<i64: 128, 32>}, {pipeline_mode = #tpu.pipeline_mode<synchronous>, transform_indices = @transform_1, window_bounds = array<i64: 32, 136>}, {transform_indices = @transform_2, window_bounds = array<i64: 128, 128>}, {transform_indices = @transform_3, window_bounds = array<i64: 8, 128>}]} {
    %c0 = arith.constant 0 : index
    %c0_0 = arith.constant 0 : index
    %0 = vector.load %arg1[%c0, %c0_0] : memref<128x32xf32, #tpu.memory_space<vmem>>, vector<128x32xf32>
    %1 = arith.truncf %0 : vector<128x32xf32> to vector<128x32xbf16>
    %c0_1 = arith.constant 0 : index
    %c0_2 = arith.constant 0 : index
    %2 = vector.load %arg2[%c0_1, %c0_2] : memref<32x136xf32, #tpu.memory_space<vmem>>, vector<32x136xf32>
    %3 = arith.truncf %2 : vector<32x136xf32> to vector<32x136xbf16>
    %cst = arith.constant dense<0.000000e+00> : vector<128x136xf32>
    %4 = tpu.matmul %1, %3, %cst {dimension_numbers = #tpu.dot_dimension_numbers<[1], [0], [0], [1], [0, 0, 1, 1], [], []>} : vector<128x32xbf16>, vector<32x136xbf16>, vector<128x136xf32> -> vector<128x136xf32>
    %5 = vector.extract_strided_slice %4 {offsets = [0, 0], sizes = [128, 128], strides = [1, 1]} : vector<128x136xf32> to vector<128x128xf32>
    %6 = arith.truncf %5 : vector<128x128xf32> to vector<128x128xbf16>
    %c0_3 = arith.constant 0 : index
    %c0_4 = arith.constant 0 : index
    %7 = vector.load %arg3[%c0_3, %c0_4] : memref<128x128xbf16, #tpu.memory_space<vmem>>, vector<128x128xbf16>
    tpu.vector_store %arg3[%c0_3, %c0_4], %6 {strides = array<i32>} : memref<128x128xbf16, #tpu.memory_space<vmem>>, vector<128x128xbf16>,
    %8 = vector.extract_strided_slice %4 {offsets = [0, 128], sizes = [128, 8], strides = [1, 1]} : vector<128x136xf32> to vector<128x8xf32>
    %9 = tpu.transpose %8, [1, 0] : vector<128x8xf32> -> vector<8x128xf32>
    %c0_5 = arith.constant 0 : index
    %c0_6 = arith.constant 0 : index
    %10 = vector.load %arg4[%c0_5, %c0_6] : memref<8x128xf32, #tpu.memory_space<vmem>>, vector<8x128xf32>
    tpu.vector_store %arg4[%c0_5, %c0_6], %9 {strides = array<i32>} : memref<8x128xf32, #tpu.memory_space<vmem>>, vector<8x128xf32>,
    return
  }
  func.func @transform_0(%arg0: i32) -> (i32, i32) {
    %c0_i32 = arith.constant 0 : i32
    %c0_i32_0 = arith.constant 0 : i32
    return %arg0, %c0_i32 : i32, i32
  }
  func.func @transform_1(%arg0: i32) -> (i32, i32) {
    %c0_i32 = arith.constant 0 : i32
    %c0_i32_0 = arith.constant 0 : i32
    %c0_i32_1 = arith.constant 0 : i32
    return %c0_i32, %c0_i32_0 : i32, i32
  }
  func.func @transform_2(%arg0: i32) -> (i32, i32) {
    %c0_i32 = arith.constant 0 : i32
    %c0_i32_0 = arith.constant 0 : i32
    return %arg0, %c0_i32 : i32, i32
  }
  func.func @transform_3(%arg0: i32) -> (i32, i32) {
    %c0_i32 = arith.constant 0 : i32
    %c0_i32_0 = arith.constant 0 : i32
    return %c0_i32, %arg0 : i32, i32
  }
}

</mosaic_0001>

<bundles_post_ra>
// kernel: tpu_custom_call.1
= control target key start
LH: loop header
LB: loop body
LE: loop exit
PB: predicated region body
PF: predicated region fallthrough
CT: control target
= control target key end

     0   :  { %9 = vsyncpa [#allocation3], 0  ;;  %v477_v7 = vmov 0   ;;  %vm52_vm0 = vcmask 261120   ;;  %s612_s0 = inlined_call_operand.vmem [shape: f32[128,32], index: 0, kind: input, shape index: {}]   ;;  %s613_s1 = inlined_call_operand.vmem [shape: f32[32,136], index: 1, kind: input, shape index: {}]   ;;  %s614_s2 = inlined_call_operand.hbm [shape: bf16[128,128], index: 2, kind: output, shape index: {0}]   ;;  %s615_s3 = inlined_call_operand.hbm [shape: f32[8,128], index: 3, kind: output, shape index: {1}]  }
   0x1   :  { %v41_v0 = vld [vmem:[%s613_s1 + $0x8] sm:$0xff]  ;;  %v43_v1 = vld [vmem:[%s613_s1 + $0x18] sm:$0xff]  ;;  %v40_v2 = vld [vmem:[%s613_s1] sm:$0xff]  ;;  %109 = vmatprep.mubr.bf16.mxu0 %v477_v7  ;;  %149 = vmatprep.mubr.bf16.mxu1 %v477_v7 }
   0x2   :  { %v49_v3 = vpack.c.bf16 %v43_v1, %v41_v0  ;;  %v42_v4 = vld [vmem:[%s613_s1 + $0x10] sm:$0xff]  ;;  %v45_v5 = vld [vmem:[%s613_s1 + $0x28] sm:$0xff]  ;;  %v47_v6 = vld [vmem:[%s613_s1 + $0x38] sm:$0xff] }
   0x3   :  { %v48_v8 = vpack.c.bf16 %v42_v4, %v40_v2  ;;  %v51_v9 = vpack.c.bf16 %v47_v6, %v45_v5  ;;  %v44_v10 = vld [vmem:[%s613_s1 + $0x20] sm:$0xff]  ;;  %v46_v11 = vld [vmem:[%s613_s1 + $0x30] sm:$0xff]  ;;  %v17_v14 = vld [vmem:[%s612_s0 + $0x8] sm:$0xff] }
   0x4   :  { %77 = vmatprep.subr.bf16.mxu0 %v49_v3  ;;  %420 = vmatprep.subr.bf16.mxu1 %v49_v3  ;;  %v50_v12 = vpack.c.bf16 %v46_v11, %v44_v10  ;;  %v16_v13 = vld [vmem:[%s612_s0] sm:$0xff]  ;;  %v25_v16 = vld [vmem:[%s612_s0 + $0x48] sm:$0xff] }
   0x5   :  { %78 = vmatpush1.bf16.msra.mxu0 %v48_v8  ;;  %422 = vmatpush1.bf16.msra.mxu1 %v48_v8  ;;  %v24_v15 = vld [vmem:[%s612_s0 + $0x40] sm:$0xff]  ;;  %v32_v17 = vpack.c.bf16 %v17_v14, %v16_v13 }
   0x6   :  { %79 = vmatprep.subr.bf16.mxu0 %v51_v9  ;;  %421 = vmatprep.subr.bf16.mxu1 %v51_v9  ;;  %v36_v18 = vpack.c.bf16 %v25_v16, %v24_v15 }
   0x9   :  { %80 = vmatpush1.bf16.msra.mxu0 %v50_v12  ;;  %423 = vmatpush1.bf16.msra.mxu1 %v50_v12 }
   0xa   :  { %10 = vsyncpa [#allocation5], 0  ;;  %v18_v19 = vld [vmem:[%s612_s0 + $0x10] sm:$0xff]  ;;  %v19_v20 = vld [vmem:[%s612_s0 + $0x18] sm:$0xff] }
   0xb   :  { %v26_v21 = vld [vmem:[%s612_s0 + $0x50] sm:$0xff]  ;;  %v27_v22 = vld [vmem:[%s612_s0 + $0x58] sm:$0xff]  ;;  %v33_v23 = vpack.c.bf16 %v19_v20, %v18_v19  ;;  %v20_v25 = vld [vmem:[%s612_s0 + $0x20] sm:$0xff] }
   0xc   :  { %333 = vmatmul.mubr.msk.bf16.vlgmr.msra.gmra.mrb[0].mxu0 %vm52_vm0, %v32_v17  ;;  %337 = vmatmul.mubr.msk.bf16.vlgmr.msra.gmra.mrb[0].mxu1 %vm52_vm0, %v36_v18  ;;  %v37_v24 = vpack.c.bf16 %v27_v22, %v26_v21  ;;  %v21_v26 = vld [vmem:[%s612_s0 + $0x28] sm:$0xff]  ;;  %v28_v27 = vld [vmem:[%s612_s0 + $0x60] sm:$0xff]  ;;  %v22_v31 = vld [vmem:[%s612_s0 + $0x30] sm:$0xff] }
   0xd   :  { %119 = vmatprep.mubr.bf16.mxu0 %v477_v7  ;;  %159 = vmatprep.mubr.bf16.mxu1 %v477_v7  ;;  %v29_v28 = vld [vmem:[%s612_s0 + $0x68] sm:$0xff]  ;;  %v34_v29 = vpack.c.bf16 %v21_v26, %v20_v25  ;;  %v23_v32 = vld [vmem:[%s612_s0 + $0x38] sm:$0xff]  ;;  %v30_v33 = vld [vmem:[%s612_s0 + $0x70] sm:$0xff] }
   0xe   :  { %v38_v30 = vpack.c.bf16 %v29_v28, %v28_v27  ;;  %v31_v34 = vld [vmem:[%s612_s0 + $0x78] sm:$0xff]  ;;  %v35_v35 = vpack.c.bf16 %v23_v32, %v22_v31  ;;  %s478_s0 = smov [#allocation2]  }
   0xf   :  { %v39_v36 = vpack.c.bf16 %v31_v34, %v30_v33  ;;  %s308_s5 = sshll.u32 %s478_s0, 4  ;;  %s309_s5 = int_to_ptr.vmem [resolvable:$true] %s308_s5 }
  0x10   :  { %s429_s6 = scalar_lea.vmem %s309_s5, 1024  ;;  %p434_p1 = scmp.lt.s32.totalorder %s309_s5, %s309_s5 }
  0x11   :  { %p430_p0 = scmp.ne.s32.totalorder %s309_s5, %s429_s6  ;;  %p435_p2 = scmp.lt.s32.totalorder %s429_s6, %s429_s6 }
  0x13   :  { %p436_p3 = por %p435_p2, %p434_p1 }
  0x14   :  { %334 = vmatmul.mubr.msk.bf16.gmra.mrb[4].mxu0 %vm52_vm0, %v33_v23  ;;  %338 = vmatmul.mubr.msk.bf16.gmra.mrb[4].mxu1 %vm52_vm0, %v37_v24 }
  0x15   :  { %129 = vmatprep.mubr.bf16.mxu0 %v477_v7  ;;  %169 = vmatprep.mubr.bf16.mxu1 %v477_v7  ;;  %p437_p4 = pnand %p436_p3, %p430_p0 }
  0x1c   :  { %335 = vmatmul.mubr.msk.bf16.gmra.mrb[8].mxu0 %vm52_vm0, %v34_v29  ;;  %339 = vmatmul.mubr.msk.bf16.gmra.mrb[8].mxu1 %vm52_vm0, %v38_v30 }
  0x1d   :  { %139 = vmatprep.mubr.bf16.mxu0 %v477_v7  ;;  %179 = vmatprep.mubr.bf16.mxu1 %v477_v7 }
  0x24   :  { %336 = vmatmul.mubr.msk.bf16.gmra.mrb[12].mxu0 %vm52_vm0, %v35_v35  ;;  %340 = vmatmul.mubr.msk.bf16.gmra.mrb[12].mxu1 %vm52_vm0, %v39_v36 }
  0xdf   :  { %v111_v37 = vpop.f32.mrb[0].mxu0  ;;  %v151_v38 = vpop.f32.mrb[0].mxu1 }
  0xe0   :  { %v113_v39 = vpop.f32.mrb[1].mxu0  ;;  %v582_v40 = vpop.f32.mrb[1].mxu1 }
  0xe1   :  { %v115_v41 = vpop.f32.mrb[2].mxu0  ;;  %270 = vxpose.xlu0.b32.start [1/16] (narrow) %v113_v39, 8  ;;  %v155_v42 = vpop.f32.mrb[2].mxu1 }
  0xe2   :  { %v376_v43 = vpack.c.bf16 %v115_v41, %v111_v37  ;;  %v117_v44 = vpop.f32.mrb[3].mxu0  ;;  %v396_v45 = vpack.c.bf16 %v155_v42, %v151_v38  ;;  %v584_v46 = vpop.f32.mrb[3].mxu1 }
  0xe4   :  { %377 = vst [vmem:[#allocation2] sm:$0xff] %v376_v43   ;;  %416 = vst [vmem:[#allocation2 + $0x20] sm:$0xff] %v396_v45  }
  0xe5   :  { %271 = vxpose.xlu0.b32.cont [2/16] (narrow) %v117_v44, 8 }
  0xe7   :  { %v121_v47 = vpop.f32.mrb[4].mxu0  ;;  %v161_v48 = vpop.f32.mrb[4].mxu1 }
  0xe8   :  { %v123_v49 = vpop.f32.mrb[5].mxu0  ;;  %v163_v50 = vpop.f32.mrb[5].mxu1 }
  0xe9   :  { %v125_v51 = vpop.f32.mrb[6].mxu0  ;;  %272 = vxpose.xlu0.b32.cont [3/16] (narrow) %v123_v49, 8  ;;  %v165_v52 = vpop.f32.mrb[6].mxu1 }
  0xea   :  { %v381_v53 = vpack.c.bf16 %v125_v51, %v121_v47  ;;  %v127_v54 = vpop.f32.mrb[7].mxu0  ;;  %v401_v55 = vpack.c.bf16 %v165_v52, %v161_v48  ;;  %v167_v56 = vpop.f32.mrb[7].mxu1 }
  0xec   :  { %413 = vst [vmem:[#allocation2 + $0x8] sm:$0xff] %v381_v53   ;;  %417 = vst [vmem:[#allocation2 + $0x28] sm:$0xff] %v401_v55  }
  0xed   :  { %273 = vxpose.xlu0.b32.cont [4/16] (narrow) %v127_v54, 8 }
  0xef   :  { %v131_v57 = vpop.f32.mrb[8].mxu0  ;;  %v171_v58 = vpop.f32.mrb[8].mxu1 }
  0xf0   :  { %v133_v59 = vpop.f32.mrb[9].mxu0  ;;  %v173_v60 = vpop.f32.mrb[9].mxu1 }
  0xf1   :  { %v135_v61 = vpop.f32.mrb[10].mxu0  ;;  %274 = vxpose.xlu0.b32.cont [5/16] (narrow) %v133_v59, 8  ;;  %v175_v62 = vpop.f32.mrb[10].mxu1 }
  0xf2   :  { %v386_v63 = vpack.c.bf16 %v135_v61, %v131_v57  ;;  %v137_v0 = vpop.f32.mrb[11].mxu0  ;;  %v406_v1 = vpack.c.bf16 %v175_v62, %v171_v58  ;;  %v177_v2 = vpop.f32.mrb[11].mxu1 }
  0xf4   :  { %414 = vst [vmem:[#allocation2 + $0x10] sm:$0xff] %v386_v63   ;;  %418 = vst [vmem:[#allocation2 + $0x30] sm:$0xff] %v406_v1  }
  0xf5   :  { %275 = vxpose.xlu0.b32.cont [6/16] (narrow) %v137_v0, 8 }
  0xf7   :  { %v141_v3 = vpop.f32.mrb[12].mxu0  ;;  %v181_v4 = vpop.f32.mrb[12].mxu1 }
  0xf8   :  { %v143_v5 = vpop.f32.mrb[13].mxu0  ;;  %v183_v6 = vpop.f32.mrb[13].mxu1 }
  0xf9   :  { %v145_v7 = vpop.f32.mrb[14].mxu0  ;;  %276 = vxpose.xlu0.b32.cont [7/16] (narrow) %v143_v5, 8  ;;  %v185_v8 = vpop.f32.mrb[14].mxu1 }
  0xfa   :  { %v391_v9 = vpack.c.bf16 %v145_v7, %v141_v3  ;;  %v147_v10 = vpop.f32.mrb[15].mxu0  ;;  %v411_v11 = vpack.c.bf16 %v185_v8, %v181_v4  ;;  %v187_v12 = vpop.f32.mrb[15].mxu1 }
  0xfc   :  { %415 = vst [vmem:[#allocation2 + $0x18] sm:$0xff] %v391_v9   ;;  %419 = vst [vmem:[#allocation2 + $0x38] sm:$0xff] %v411_v11  }
  0xfd   :  { %277 = vxpose.xlu0.b32.cont [8/16] (narrow) %v147_v10, 8 }
  0xfe   :  { %440 = shalt.err (!%p437_p4)
}
  0xff   :  { %s441_s8 = scalar_lea.hbm %s614_s2, 1024 }
 0x100   :  { %p442_p5 = scmp.ne.s32.totalorder %s614_s2, %s441_s8  ;;  %p445_p6 = scmp.lt.u32.totalorder %s441_s8, %s614_s2 }
 0x102   :  { %p447_p7 = pnand %p445_p6, %p442_p5 }
 0x104   :  { %450 = shalt.err (!%p447_p7)
}
 0x105   :  { %s479_s13 = smov 64   ;;  %s480_s14 = smov 4   ;;  %278 = vxpose.xlu0.b32.cont [9/16] (narrow) %v582_v40, 8 }
 0x106   :  { %314 = dma.vmem_to_hbm [thread:$0]  %s309_s5, 1024, %s614_s2, [#allocation3], %s479_s13, %s479_s13, %s480_s14  }
 0x107   :  { %s481_s17 = smov [#allocation4]  }
 0x108   :  { %s321_s18 = sshll.u32 %s481_s17, 4  ;;  %s322_s18 = int_to_ptr.vmem [resolvable:$true] %s321_s18 }
 0x109   :  { %279 = vxpose.xlu0.b32.cont [10/16] (narrow) %v584_v46, 8  ;;  %s451_s19 = scalar_lea.vmem %s322_s18, 128  ;;  %p456_p9 = scmp.lt.s32.totalorder %s322_s18, %s322_s18 }
 0x10a   :  { %p452_p8 = scmp.ne.s32.totalorder %s322_s18, %s451_s19  ;;  %p457_p10 = scmp.lt.s32.totalorder %s451_s19, %s451_s19 }
 0x10c   :  { %p458_p11 = por %p457_p10, %p456_p9 }
 0x10d   :  { %280 = vxpose.xlu0.b32.cont [11/16] (narrow) %v163_v50, 8 }
 0x10e   :  { %p459_p12 = pnand %p458_p11, %p452_p8 }
 0x111   :  { %281 = vxpose.xlu0.b32.cont [12/16] (narrow) %v167_v56, 8 }
 0x115   :  { %282 = vxpose.xlu0.b32.cont [13/16] (narrow) %v173_v60, 8 }
 0x119   :  { %283 = vxpose.xlu0.b32.cont [14/16] (narrow) %v177_v2, 8 }
 0x11d   :  { %284 = vxpose.xlu0.b32.cont [15/16] (narrow) %v183_v6, 8 }
 0x121   :  { %285 = vxpose.xlu0.b32.end [16/16] (narrow) %v187_v12, 8 }
 0x165   :  { %v286_v13 = vpop.trf.xlu0 }
 0x166   :  { %302 = vst [vmem:[#allocation4] sm:$0xff] %v286_v13 }
 0x167   :  { %462 = shalt.err (!%p459_p12)
}
 0x168   :  { %s463_s21 = scalar_lea.hbm %s615_s3, 128 }
 0x169   :  { %p464_p13 = scmp.ne.s32.totalorder %s615_s3, %s463_s21  ;;  %p467_p0 = scmp.lt.u32.totalorder %s463_s21, %s615_s3 }
 0x16b   :  { %p469_p1 = pnand %p467_p0, %p464_p13 }
 0x16d   :  { %472 = shalt.err (!%p469_p1)
}
 0x16e   :  { %324 = dma.vmem_to_hbm [thread:$0]  %s322_s18, 128, %s615_s3, [#allocation5]  }
 0x16f   :  { %473 = dma.done.wait [#allocation3], 1024  }
 0x170   :  { %474 = vsyncadd [#allocation3], 4294966272 }
 0x171   :  { %475 = dma.done.wait [#allocation5], 128  }
 0x172   :  { %476 = vsyncadd [#allocation5], 4294967168 }
 0x173   :  { %331 = vsyncpa [#allocation3], 1 }
 0x174   :  { %332 = vsyncpa [#allocation5], 1 }

</bundles_post_ra>
